<compile_context>
chip_gen: v7x
topology: tpu7x:2x2x1
jax: 0.10.0
libtpu: 0.0.40
codegen_flags: <defaults>
</compile_context>

<pallas_src>
import functools

import jax
import jax.numpy as jnp
from jax.experimental import pallas as pl
from jax.experimental.pallas import tpu as pltpu


B_TILE = 512  # batch columns per grid step (multiple of 128; fits easily in VMEM)


def _mlp_kernel(xT_ref,
                w1_ref, b1_ref,
                w2_ref, b2_ref,
                w3_ref, b3_ref,
                w4_ref, b4_ref,
                w5_ref, b5_ref,
                w6_ref, b6_ref,
                o_ref):
    """Fused forward pass for one batch tile, feature-major layout.

    xT_ref: [F, B_TILE]  (batch on lanes)
    w*_ref: [out, in]    (PyTorch layout)
    b*_ref: [out, 1]     (broadcasts over the lane/batch dim)
    o_ref : [1, B_TILE]
    """
    h = xT_ref[...]  # already float32

    def dense_relu(h, w_ref, b_ref):
        # [out, in] @ [in, B_TILE] -> [out, B_TILE], f32 accumulation on the MXU.
        y = jnp.dot(w_ref[...], h, preferred_element_type=jnp.float32)
        y = y + b_ref[...]
        return jnp.maximum(y, 0.0)

    h = dense_relu(h, w1_ref, b1_ref)
    h = dense_relu(h, w2_ref, b2_ref)
    h = dense_relu(h, w3_ref, b3_ref)
    h = dense_relu(h, w4_ref, b4_ref)
    h = dense_relu(h, w5_ref, b5_ref)

    # Output layer (no activation): [1, 28] @ [28, B_TILE] -> [1, B_TILE].
    # In the transposed layout this is a single LHS slab -> lane-dense store.
    out = jnp.dot(w6_ref[...], h, preferred_element_type=jnp.float32) + b6_ref[...]
    o_ref[...] = out.astype(o_ref.dtype)


@functools.partial(jax.jit, static_argnames=("b_tile",))
def mlp_forward(x, params, *, b_tile=B_TILE):
    """x: [B, F] float32. params: tuple of (w, b) with w: [out, in], b: [out, 1].

    Returns [B, 1], matching the PyTorch module's output.
    """
    batch, num_features = x.shape
    num_tiles = pl.cdiv(batch, b_tile)
    padded_b = num_tiles * b_tile

    # Pad batch up to a tile multiple, then go feature-major: [F, padded_B].
    xT = jnp.pad(x, ((0, padded_b - batch), (0, 0))).T

    # Constant index_map for VMEM-resident weights/biases (defined once; no
    # loop-variable capture / late-binding hazard).
    const_map = lambda i: (0, 0)
    x_map = lambda i: (0, i)

    flat_args = [xT]
    in_specs = [pl.BlockSpec((num_features, b_tile), x_map)]
    for (w, b) in params:
        flat_args.append(w)
        flat_args.append(b)
        in_specs.append(pl.BlockSpec(w.shape, const_map))
        in_specs.append(pl.BlockSpec(b.shape, const_map))

    out_shape = jax.ShapeDtypeStruct((1, padded_b), x.dtype)
    out_spec = pl.BlockSpec((1, b_tile), x_map)

    # Advisory cost hint for XLA's scheduler.
    flops = 2 * padded_b * sum(int(w.shape[0]) * int(w.shape[1]) for (w, _) in params)
    bytes_accessed = (xT.size * xT.dtype.itemsize
                      + padded_b * x.dtype.itemsize
                      + sum(w.size * w.dtype.itemsize + b.size * b.dtype.itemsize
                            for (w, b) in params))
    cost = pl.CostEstimate(flops=flops, transcendentals=0,
                           bytes_accessed=bytes_accessed)

    out = pl.pallas_call(
        _mlp_kernel,
        out_shape=out_shape,
        grid=(num_tiles,),
        in_specs=in_specs,
        out_specs=out_spec,
        compiler_params=pltpu.CompilerParams(
            dimension_semantics=("parallel",)),
        cost_estimate=cost,
    )(*flat_args)

    # Slice off batch padding and return in PyTorch's [B, 1] layout.
    return out[:, :batch].T


def init_params(key, num_features):
    """Deterministic init matching PyTorch nn.Linear's U(-1/sqrt(in), 1/sqrt(in)).

    Weights are stored in PyTorch layout [out, in]; biases as [out, 1].
    """
    dims = [(num_features, 14), (14, 28), (28, 28), (28, 28), (28, 28), (28, 1)]
    params = []
    for (fan_in, fan_out) in dims:
        key, kw, kb = jax.random.split(key, 3)
        bound = 1.0 / (fan_in ** 0.5)
        w = jax.random.uniform(kw, (fan_out, fan_in), jnp.float32, -bound, bound)
        b = jax.random.uniform(kb, (fan_out, 1), jnp.float32, -bound, bound)
        params.append((w, b))
    return tuple(params)


def reference_forward(x, params):
    h = x
    for i, (w, b) in enumerate(params):
        h = h @ w.T + b.T
        if i < len(params) - 1:
            h = jnp.maximum(h, 0.0)
    return h


if __name__ == "__main__":
    key = jax.random.PRNGKey(0)
    num_features = 16
    batch = 8

    kx, kp = jax.random.split(key)
    x = jax.random.normal(kx, (batch, num_features), jnp.float32)
    params = init_params(kp, num_features)

    out = mlp_forward(x, params)
    out = jax.block_until_ready(out)

    ref = reference_forward(x, params)
    assert out.shape == (batch, 1), out.shape
    assert jnp.allclose(out, ref, atol=1e-5, rtol=1e-5), (out, ref)

    print("KERNEL_OK")
</pallas_src>

<mosaic_0001>
module attributes {stable_mosaic.version = 11 : i64} {
  func.func @_mlp_kernel(%arg0: i32, %arg1: memref<16x512xf32, #tpu.memory_space<vmem>>, %arg2: memref<14x16xf32, #tpu.memory_space<vmem>>, %arg3: memref<14x1xf32, #tpu.memory_space<vmem>>, %arg4: memref<28x14xf32, #tpu.memory_space<vmem>>, %arg5: memref<28x1xf32, #tpu.memory_space<vmem>>, %arg6: memref<28x28xf32, #tpu.memory_space<vmem>>, %arg7: memref<28x1xf32, #tpu.memory_space<vmem>>, %arg8: memref<28x28xf32, #tpu.memory_space<vmem>>, %arg9: memref<28x1xf32, #tpu.memory_space<vmem>>, %arg10: memref<28x28xf32, #tpu.memory_space<vmem>>, %arg11: memref<28x1xf32, #tpu.memory_space<vmem>>, %arg12: memref<1x28xf32, #tpu.memory_space<vmem>>, %arg13: memref<1x1xf32, #tpu.memory_space<vmem>>, %arg14: memref<1x512xf32, #tpu.memory_space<vmem>>) attributes {dimension_semantics = [#tpu.dimension_semantics<parallel>], iteration_bounds = array<i64: 1>, scalar_prefetch = 0 : i64, scratch_operands = 0 : i64, tpu.core_type = #tpu.core_type<tc>, window_params = [{transform_indices = @transform_0, window_bounds = array<i64: 16, 512>}, {pipeline_mode = #tpu.pipeline_mode<synchronous>, transform_indices = @transform_1, window_bounds = array<i64: 14, 16>}, {pipeline_mode = #tpu.pipeline_mode<synchronous>, transform_indices = @transform_2, window_bounds = array<i64: 14, 1>}, {pipeline_mode = #tpu.pipeline_mode<synchronous>, transform_indices = @transform_3, window_bounds = array<i64: 28, 14>}, {pipeline_mode = #tpu.pipeline_mode<synchronous>, transform_indices = @transform_4, window_bounds = array<i64: 28, 1>}, {pipeline_mode = #tpu.pipeline_mode<synchronous>, transform_indices = @transform_5, window_bounds = array<i64: 28, 28>}, {pipeline_mode = #tpu.pipeline_mode<synchronous>, transform_indices = @transform_6, window_bounds = array<i64: 28, 1>}, {pipeline_mode = #tpu.pipeline_mode<synchronous>, transform_indices = @transform_7, window_bounds = array<i64: 28, 28>}, {pipeline_mode = #tpu.pipeline_mode<synchronous>, transform_indices = @transform_8, window_bounds = array<i64: 28, 1>}, {pipeline_mode = #tpu.pipeline_mode<synchronous>, transform_indices = @transform_9, window_bounds = array<i64: 28, 28>}, {pipeline_mode = #tpu.pipeline_mode<synchronous>, transform_indices = @transform_10, window_bounds = array<i64: 28, 1>}, {pipeline_mode = #tpu.pipeline_mode<synchronous>, transform_indices = @transform_11, window_bounds = array<i64: 1, 28>}, {pipeline_mode = #tpu.pipeline_mode<synchronous>, transform_indices = @transform_12, window_bounds = array<i64: 1, 1>}, {transform_indices = @transform_13, window_bounds = array<i64: 1, 512>}]} {
    %c0 = arith.constant 0 : index
    %c0_0 = arith.constant 0 : index
    %0 = vector.load %arg1[%c0, %c0_0] : memref<16x512xf32, #tpu.memory_space<vmem>>, vector<16x512xf32>
    %c0_1 = arith.constant 0 : index
    %c0_2 = arith.constant 0 : index
    %1 = vector.load %arg2[%c0_1, %c0_2] : memref<14x16xf32, #tpu.memory_space<vmem>>, vector<14x16xf32>
    %cst = arith.constant dense<0.000000e+00> : vector<14x512xf32>
    %2 = tpu.matmul %1, %0, %cst {dimension_numbers = #tpu.dot_dimension_numbers<[1], [0], [0], [1], [0, 0, 1, 1], [], []>} : vector<14x16xf32>, vector<16x512xf32>, vector<14x512xf32> -> vector<14x512xf32>
    %c0_3 = arith.constant 0 : index
    %c0_4 = arith.constant 0 : index
    %3 = vector.load %arg3[%c0_3, %c0_4] : memref<14x1xf32, #tpu.memory_space<vmem>>, vector<14x1xf32>
    %4 = vector.broadcast %3 : vector<14x1xf32> to vector<14x512xf32>
    %5 = arith.addf %2, %4 : vector<14x512xf32>
    %cst_5 = arith.constant 0.000000e+00 : f32
    %6 = vector.broadcast %cst_5 : f32 to vector<14x512xf32>
    %7 = arith.maximumf %5, %6 : vector<14x512xf32>
    %c0_6 = arith.constant 0 : index
    %c0_7 = arith.constant 0 : index
    %8 = vector.load %arg4[%c0_6, %c0_7] : memref<28x14xf32, #tpu.memory_space<vmem>>, vector<28x14xf32>
    %cst_8 = arith.constant dense<0.000000e+00> : vector<28x512xf32>
    %9 = tpu.matmul %8, %7, %cst_8 {dimension_numbers = #tpu.dot_dimension_numbers<[1], [0], [0], [1], [0, 0, 1, 1], [], []>} : vector<28x14xf32>, vector<14x512xf32>, vector<28x512xf32> -> vector<28x512xf32>
    %c0_9 = arith.constant 0 : index
    %c0_10 = arith.constant 0 : index
    %10 = vector.load %arg5[%c0_9, %c0_10] : memref<28x1xf32, #tpu.memory_space<vmem>>, vector<28x1xf32>
    %11 = vector.broadcast %10 : vector<28x1xf32> to vector<28x512xf32>
    %12 = arith.addf %9, %11 : vector<28x512xf32>
    %cst_11 = arith.constant 0.000000e+00 : f32
    %13 = vector.broadcast %cst_11 : f32 to vector<28x512xf32>
    %14 = arith.maximumf %12, %13 : vector<28x512xf32>
    %c0_12 = arith.constant 0 : index
    %c0_13 = arith.constant 0 : index
    %15 = vector.load %arg6[%c0_12, %c0_13] : memref<28x28xf32, #tpu.memory_space<vmem>>, vector<28x28xf32>
    %cst_14 = arith.constant dense<0.000000e+00> : vector<28x512xf32>
    %16 = tpu.matmul %15, %14, %cst_14 {dimension_numbers = #tpu.dot_dimension_numbers<[1], [0], [0], [1], [0, 0, 1, 1], [], []>} : vector<28x28xf32>, vector<28x512xf32>, vector<28x512xf32> -> vector<28x512xf32>
    %c0_15 = arith.constant 0 : index
    %c0_16 = arith.constant 0 : index
    %17 = vector.load %arg7[%c0_15, %c0_16] : memref<28x1xf32, #tpu.memory_space<vmem>>, vector<28x1xf32>
    %18 = vector.broadcast %17 : vector<28x1xf32> to vector<28x512xf32>
    %19 = arith.addf %16, %18 : vector<28x512xf32>
    %cst_17 = arith.constant 0.000000e+00 : f32
    %20 = vector.broadcast %cst_17 : f32 to vector<28x512xf32>
    %21 = arith.maximumf %19, %20 : vector<28x512xf32>
    %c0_18 = arith.constant 0 : index
    %c0_19 = arith.constant 0 : index
    %22 = vector.load %arg8[%c0_18, %c0_19] : memref<28x28xf32, #tpu.memory_space<vmem>>, vector<28x28xf32>
    %cst_20 = arith.constant dense<0.000000e+00> : vector<28x512xf32>
    %23 = tpu.matmul %22, %21, %cst_20 {dimension_numbers = #tpu.dot_dimension_numbers<[1], [0], [0], [1], [0, 0, 1, 1], [], []>} : vector<28x28xf32>, vector<28x512xf32>, vector<28x512xf32> -> vector<28x512xf32>
    %c0_21 = arith.constant 0 : index
    %c0_22 = arith.constant 0 : index
    %24 = vector.load %arg9[%c0_21, %c0_22] : memref<28x1xf32, #tpu.memory_space<vmem>>, vector<28x1xf32>
    %25 = vector.broadcast %24 : vector<28x1xf32> to vector<28x512xf32>
    %26 = arith.addf %23, %25 : vector<28x512xf32>
    %cst_23 = arith.constant 0.000000e+00 : f32
    %27 = vector.broadcast %cst_23 : f32 to vector<28x512xf32>
    %28 = arith.maximumf %26, %27 : vector<28x512xf32>
    %c0_24 = arith.constant 0 : index
    %c0_25 = arith.constant 0 : index
    %29 = vector.load %arg10[%c0_24, %c0_25] : memref<28x28xf32, #tpu.memory_space<vmem>>, vector<28x28xf32>
    %cst_26 = arith.constant dense<0.000000e+00> : vector<28x512xf32>
    %30 = tpu.matmul %29, %28, %cst_26 {dimension_numbers = #tpu.dot_dimension_numbers<[1], [0], [0], [1], [0, 0, 1, 1], [], []>} : vector<28x28xf32>, vector<28x512xf32>, vector<28x512xf32> -> vector<28x512xf32>
    %c0_27 = arith.constant 0 : index
    %c0_28 = arith.constant 0 : index
    %31 = vector.load %arg11[%c0_27, %c0_28] : memref<28x1xf32, #tpu.memory_space<vmem>>, vector<28x1xf32>
    %32 = vector.broadcast %31 : vector<28x1xf32> to vector<28x512xf32>
    %33 = arith.addf %30, %32 : vector<28x512xf32>
    %cst_29 = arith.constant 0.000000e+00 : f32
    %34 = vector.broadcast %cst_29 : f32 to vector<28x512xf32>
    %35 = arith.maximumf %33, %34 : vector<28x512xf32>
    %c0_30 = arith.constant 0 : index
    %c0_31 = arith.constant 0 : index
    %36 = vector.load %arg12[%c0_30, %c0_31] : memref<1x28xf32, #tpu.memory_space<vmem>>, vector<1x28xf32>
    %cst_32 = arith.constant dense<0.000000e+00> : vector<1x512xf32>
    %37 = tpu.matmul %36, %35, %cst_32 {dimension_numbers = #tpu.dot_dimension_numbers<[1], [0], [0], [1], [0, 0, 1, 1], [], []>} : vector<1x28xf32>, vector<28x512xf32>, vector<1x512xf32> -> vector<1x512xf32>
    %c0_33 = arith.constant 0 : index
    %c0_34 = arith.constant 0 : index
    %38 = vector.load %arg13[%c0_33, %c0_34] : memref<1x1xf32, #tpu.memory_space<vmem>>, vector<1x1xf32>
    %39 = vector.broadcast %38 : vector<1x1xf32> to vector<1x512xf32>
    %40 = arith.addf %37, %39 : vector<1x512xf32>
    %c0_35 = arith.constant 0 : index
    %c0_36 = arith.constant 0 : index
    %41 = vector.load %arg14[%c0_35, %c0_36] : memref<1x512xf32, #tpu.memory_space<vmem>>, vector<1x512xf32>
    tpu.vector_store %arg14[%c0_35, %c0_36], %40 {strides = array<i32>} : memref<1x512xf32, #tpu.memory_space<vmem>>, vector<1x512xf32>,
    return
  }
  func.func @transform_0(%arg0: i32) -> (i32, i32) {
    %c0_i32 = arith.constant 0 : i32
    %c0_i32_0 = arith.constant 0 : i32
    return %c0_i32, %arg0 : i32, i32
  }
  func.func @transform_1(%arg0: i32) -> (i32, i32) {
    %c0_i32 = arith.constant 0 : i32
    %c0_i32_0 = arith.constant 0 : i32
    %c0_i32_1 = arith.constant 0 : i32
    return %c0_i32, %c0_i32_0 : i32, i32
  }
  func.func @transform_2(%arg0: i32) -> (i32, i32) {
    %c0_i32 = arith.constant 0 : i32
    %c0_i32_0 = arith.constant 0 : i32
    %c0_i32_1 = arith.constant 0 : i32
    return %c0_i32, %c0_i32_0 : i32, i32
  }
  func.func @transform_3(%arg0: i32) -> (i32, i32) {
    %c0_i32 = arith.constant 0 : i32
    %c0_i32_0 = arith.constant 0 : i32
    %c0_i32_1 = arith.constant 0 : i32
    return %c0_i32, %c0_i32_0 : i32, i32
  }
  func.func @transform_4(%arg0: i32) -> (i32, i32) {
    %c0_i32 = arith.constant 0 : i32
    %c0_i32_0 = arith.constant 0 : i32
    %c0_i32_1 = arith.constant 0 : i32
    return %c0_i32, %c0_i32_0 : i32, i32
  }
  func.func @transform_5(%arg0: i32) -> (i32, i32) {
    %c0_i32 = arith.constant 0 : i32
    %c0_i32_0 = arith.constant 0 : i32
    %c0_i32_1 = arith.constant 0 : i32
    return %c0_i32, %c0_i32_0 : i32, i32
  }
  func.func @transform_6(%arg0: i32) -> (i32, i32) {
    %c0_i32 = arith.constant 0 : i32
    %c0_i32_0 = arith.constant 0 : i32
    %c0_i32_1 = arith.constant 0 : i32
    return %c0_i32, %c0_i32_0 : i32, i32
  }
  func.func @transform_7(%arg0: i32) -> (i32, i32) {
    %c0_i32 = arith.constant 0 : i32
    %c0_i32_0 = arith.constant 0 : i32
    %c0_i32_1 = arith.constant 0 : i32
    return %c0_i32, %c0_i32_0 : i32, i32
  }
  func.func @transform_8(%arg0: i32) -> (i32, i32) {
    %c0_i32 = arith.constant 0 : i32
    %c0_i32_0 = arith.constant 0 : i32
    %c0_i32_1 = arith.constant 0 : i32
    return %c0_i32, %c0_i32_0 : i32, i32
  }
  func.func @transform_9(%arg0: i32) -> (i32, i32) {
    %c0_i32 = arith.constant 0 : i32
    %c0_i32_0 = arith.constant 0 : i32
    %c0_i32_1 = arith.constant 0 : i32
    return %c0_i32, %c0_i32_0 : i32, i32
  }
  func.func @transform_10(%arg0: i32) -> (i32, i32) {
    %c0_i32 = arith.constant 0 : i32
    %c0_i32_0 = arith.constant 0 : i32
    %c0_i32_1 = arith.constant 0 : i32
    return %c0_i32, %c0_i32_0 : i32, i32
  }
  func.func @transform_11(%arg0: i32) -> (i32, i32) {
    %c0_i32 = arith.constant 0 : i32
    %c0_i32_0 = arith.constant 0 : i32
    %c0_i32_1 = arith.constant 0 : i32
    return %c0_i32, %c0_i32_0 : i32, i32
  }
  func.func @transform_12(%arg0: i32) -> (i32, i32) {
    %c0_i32 = arith.constant 0 : i32
    %c0_i32_0 = arith.constant 0 : i32
    %c0_i32_1 = arith.constant 0 : i32
    return %c0_i32, %c0_i32_0 : i32, i32
  }
  func.func @transform_13(%arg0: i32) -> (i32, i32) {
    %c0_i32 = arith.constant 0 : i32
    %c0_i32_0 = arith.constant 0 : i32
    return %c0_i32, %arg0 : i32, i32
  }
}

</mosaic_0001>

<bundles_post_ra>
// kernel: mlp_forward.1
= control target key start
LH: loop header
LB: loop body
LE: loop exit
PB: predicated region body
PF: predicated region fallthrough
CT: control target
= control target key end

     0   :  { %v1595_v3 = vmov 0.0   ;;  %v1596_v9 = vmov 0   ;;  %vm68_vm0 = vcmask 130048   ;;  %vm278_vm1 = vcmask 1045504   ;;  %s1920_s0 = inlined_call_operand.vmem [shape: f32[16,512], index: 0, kind: input, shape index: {}]   ;;  %s1921_s12 = inlined_call_operand.<no memory space> [shape: f32[1,1], index: 12, kind: input, shape index: {}]   ;;  %s1922_s2 = inlined_call_operand.vmem [shape: f32[14,1], index: 2, kind: input, shape index: {}]   ;;  %s1923_s1 = inlined_call_operand.vmem [shape: f32[14,16], index: 1, kind: input, shape index: {}]   ;;  %s1924_s4 = inlined_call_operand.vmem [shape: f32[28,1], index: 4, kind: input, shape index: {}]   ;;  %s1925_s6 = inlined_call_operand.vmem [shape: f32[28,1], index: 6, kind: input, shape index: {}]   ;;  %s1926_s8 = inlined_call_operand.vmem [shape: f32[28,1], index: 8, kind: input, shape index: {}]   ;;  %s1927_s10 = inlined_call_operand.vmem [shape: f32[28,1], index: 10, kind: input, shape index: {}]   ;;  %s1928_s3 = inlined_call_operand.vmem [shape: f32[28,14], index: 3, kind: input, shape index: {}]   ;;  %s1929_s5 = inlined_call_operand.vmem [shape: f32[28,28], index: 5, kind: input, shape index: {}]   ;;  %s1930_s7 = inlined_call_operand.vmem [shape: f32[28,28], index: 7, kind: input, shape index: {}]   ;;  %s1931_s9 = inlined_call_operand.vmem [shape: f32[28,28], index: 9, kind: input, shape index: {}]   ;;  %s1932_s11 = inlined_call_operand.vmem [shape: f32[1,28], index: 11, kind: input, shape index: {}]   ;;  %s1933_s13 = inlined_call_operand.vmem [shape: f32[1,512], index: 13, kind: output, shape index: {}]  }
   0x1   :  { %v47_v0 = vld [vmem:[%s1920_s0 + $0x8] sm:$0xff]  ;;  %v49_v2 = vld [vmem:[%s1920_s0 + $0x18] sm:$0xff]  ;;  %139 = vmatprep.mubr.f32.mxu0 %v1595_v3  ;;  %216 = vmatprep.mubr.f32.mxu1 %v1595_v3  ;;  %v18_v4 = vstv %s1921_s12  ;;  %v46_v7 = vld [vmem:[%s1920_s0] sm:$0xff]  ;;  %vm1597_vm2 = vmmov 1   ;;  %vm265_vm4 = vcmask 113664   ;;  %vm526_vm5 = vcmask 1043456  }
   0x2   :  { %v51_v1 = vld [vmem:[%s1920_s0 + $0x28] sm:$0xff]  ;;  %v53_v6 = vld [vmem:[%s1920_s0 + $0x38] sm:$0xff]  ;;  %v50_v8 = vld [vmem:[%s1920_s0 + $0x20] sm:$0xff]  ;;  %1593 = vset.pattern.permute.xlu0 %v1596_v9  ;;  %19 = vst [vmem:[#allocation2] sm:$0x1] %v18_v4  ;;  %1594 = vset.pattern.permute.xlu1 %v1596_v9  ;;  %vm513_vm7 = vcmask 228352  }
   0x3   :  { %v1489_v5 = vpack.c.bf16 %v51_v1, %v47_v0  ;;  %v1493_v10 = vpack.c.bf16 %v53_v6, %v49_v2  ;;  %v1491_v11 = vpack.c.bf16 %v50_v8, %v46_v7  ;;  %v48_v12 = vld [vmem:[%s1920_s0 + $0x10] sm:$0xff]  ;;  %v56_v15 = vld [vmem:[%s1922_s2] sm:$0xff]  ;;  %v57_v17 = vld [vmem:[%s1922_s2 + $0x8] sm:$0x3f] }
   0x4   :  { %v52_v13 = vld [vmem:[%s1920_s0 + $0x30] sm:$0xff]  ;;  %v54_v16 = vld [vmem:[%s1923_s1] sm:$0xff]  ;;  %60 = vperm.xlu0 %1593, %v56_v15   ;;  %v55_v18 = vld [vmem:[%s1923_s1 + $0x8] sm:$0x3f] }
   0x5   :  { %1490 = vmatprep.subr.bf16.mxu0 %v1489_v5  ;;  %v1495_v14 = vpack.c.bf16 %v52_v13, %v48_v12  ;;  %1494 = vmatprep.subr.bf16.mxu1 %v1493_v10  ;;  %v243_v19 = vld [vmem:[%s1924_s4 + $0x10] sm:$0xff]  ;;  %v489_v20 = vld [vmem:[%s1925_s6] sm:$0xff]  ;;  %v242_v28 = vld [vmem:[%s1924_s4 + $0x8] sm:$0xff] }
   0x6   :  { %1492 = vmatpush1.bf16.msra.mxu0 %v1491_v11  ;;  %v491_v21 = vld [vmem:[%s1925_s6 + $0x10] sm:$0xff]  ;;  %v737_v22 = vld [vmem:[%s1926_s8] sm:$0xff]  ;;  %v244_v29 = vld [vmem:[%s1924_s4 + $0x18] sm:$0xf] }
   0x7   :  { %1496 = vmatpush1.bf16.msra.mxu1 %v1495_v14  ;;  %v739_v23 = vld [vmem:[%s1926_s8 + $0x10] sm:$0xff]  ;;  %v983_v24 = vld [vmem:[%s1927_s10] sm:$0xff]  ;;  %v490_v30 = vld [vmem:[%s1925_s6 + $0x8] sm:$0xff] }
   0x8   :  { %65 = vperm.xlu0 %1593, %v57_v17   ;;  %v985_v25 = vld [vmem:[%s1927_s10 + $0x10] sm:$0xff]  ;;  %v241_v27 = vld [vmem:[%s1924_s4] sm:$0xff]  ;;  %v492_v31 = vld [vmem:[%s1925_s6 + $0x18] sm:$0xf] }
   0x9   :  { %1431 = vmatmul.mubr.msk.f32.vlgmr.msra.gmra.mrb[0].mxu0 %vm68_vm0, %v54_v16  ;;  %v1226_v26 = vld [vmem:[#allocation2] sm:$0x1]  ;;  %247 = vperm.xlu1 %1594, %v241_v27   ;;  %v738_v32 = vld [vmem:[%s1926_s8 + $0x8] sm:$0xff]  ;;  %v740_v33 = vld [vmem:[%s1926_s8 + $0x18] sm:$0xf] }
   0xa   :  { %1433 = vmatmul.mubr.msk.f32.vlgmr.msra.gmra.mrb[0].mxu1 %vm68_vm0, %v54_v16  ;;  %145 = vmatprep.mubr.f32.mxu0 %v1595_v3  ;;  %v984_v34 = vld [vmem:[%s1927_s10 + $0x8] sm:$0xff]  ;;  %v986_v35 = vld [vmem:[%s1927_s10 + $0x18] sm:$0xf]  ;;  %vm1498_vm3 = vmpackc.low %vm278_vm1, %vm1597_vm2 }
   0xb   :  { %222 = vmatprep.mubr.f32.mxu1 %v1595_v3  ;;  %v237_v2 = vld [vmem:[%s1928_s3] sm:$0xff]  ;;  %v238_v4 = vld [vmem:[%s1928_s3 + $0x8] sm:$0xff]  ;;  %v239_v5 = vld [vmem:[%s1928_s3 + $0x10] sm:$0xff] }
   0xc   :  { %257 = vperm.xlu0 %1593, %v243_v19   ;;  %v240_v6 = vld [vmem:[%s1928_s3 + $0x18] sm:$0xf]  ;;  %vm1792_vm6 = vmpackc.low %vm526_vm5, %vm1597_vm2 }
   0xd   :  { %1432 = vmatmul.mubr.msk.f32.gmra.mrb[2].mxu0 %vm68_vm0, %v55_v18  ;;  %252 = vperm.xlu1 %1594, %v242_v28  }
   0xe   :  { %1434 = vmatmul.mubr.msk.f32.gmra.mrb[2].mxu1 %vm68_vm0, %v55_v18  ;;  %355 = vmatprep.mubr.f32.mxu0 %v1595_v3 }
   0xf   :  { %444 = vmatprep.mubr.f32.mxu1 %v1595_v3 }
  0x10   :  { %495 = vperm.xlu0 %1593, %v489_v20  }
  0x11   :  { %262 = vperm.xlu1 %1594, %v244_v29  }
  0x14   :  { %505 = vperm.xlu0 %1593, %v491_v21  }
  0x15   :  { %500 = vperm.xlu1 %1594, %v490_v30  }
  0x18   :  { %743 = vperm.xlu0 %1593, %v737_v22  }
  0x19   :  { %510 = vperm.xlu1 %1594, %v492_v31  }
  0x1c   :  { %753 = vperm.xlu0 %1593, %v739_v23  }
  0x1d   :  { %748 = vperm.xlu1 %1594, %v738_v32  }
  0x20   :  { %989 = vperm.xlu0 %1593, %v983_v24  }
  0x21   :  { %758 = vperm.xlu1 %1594, %v740_v33  }
  0x24   :  { %999 = vperm.xlu0 %1593, %v985_v25  }
  0x25   :  { %994 = vperm.xlu1 %1594, %v984_v34  }
  0x28   :  { %1229 = vperm.xlu0 %1593, %v1226_v26  }
  0x29   :  { %1004 = vperm.xlu1 %1594, %v986_v35  }
  0x83   :  { %v61_v36 = vpop.permute.xlu0 %60 }
  0x87   :  { %v66_v42 = vpop.permute.xlu0 %65 }
  0x88   :  { %v248_v7 = vpop.permute.xlu1 %247 }
  0x8c   :  { %v253_v13 = vpop.permute.xlu1 %252 }
  0xdc   :  { %v141_v37 = vpop.f32.mrb[0].mxu0 }
  0xdd   :  { %v218_v38 = vpop.f32.mrb[0].mxu1  ;;  %v143_v39 = vpop.f32.mrb[1].mxu0  ;;  %v142_v41 = vadd.f32 %v141_v37, %v61_v36 }
  0xde   :  { %v220_v40 = vpop.f32.mrb[1].mxu1  ;;  %v219_v43 = vadd.f32 %v218_v38, %v61_v36  ;;  %v144_v44 = vadd.f32 %v143_v39, %v61_v36  ;;  %v258_v37 = vpop.permute.xlu0 %257 }
  0xdf   :  { %v221_v46 = vadd.f32 %v220_v40, %v61_v36  ;;  %v229_v53 = vmax.f32 %v142_v41, 0.0 }
  0xe0   :  { %v147_v45 = vpop.f32.mrb[2].mxu0  ;;  %v231_v56 = vmax.f32 %v219_v43, 0.0  ;;  %v230_v57 = vmax.f32 %v144_v44, 0.0  ;;  %v263_v43 = vpop.permute.xlu1 %262 }
  0xe1   :  { %v148_v47 = vadd.f32 %v147_v45, %v66_v42  ;;  %v224_v48 = vpop.f32.mrb[2].mxu1  ;;  %v149_v49 = vpop.f32.mrb[3].mxu0  ;;  %v232_v60 = vmax.f32 %v221_v46, 0.0 }
  0xe2   :  { %v225_v50 = vadd.f32 %v224_v48, %v66_v42  ;;  %v150_v51 = vadd.f32 %v149_v49, %v66_v42  ;;  %v226_v52 = vpop.f32.mrb[3].mxu1 }
  0xe3   :  { %v233_v54 = vmax.f32 %v148_v47, 0.0  ;;  %v227_v55 = vadd.f32 %v226_v52, %v66_v42 }
  0xe4   :  { %v235_v58 = vmax.f32 %v225_v50, 0.0  ;;  %v234_v59 = vmax.f32 %v150_v51, 0.0 }
  0xe5   :  { %v1500_v61 = vpack.c.bf16 %v233_v54, %v229_v53  ;;  %v236_v62 = vmax.f32 %v227_v55, 0.0 }
  0xe6   :  { %v1506_v63 = vpack.c.bf16 %v235_v58, %v231_v56  ;;  %v1497_v0 = vpack.c.bf16 %v234_v59, %v230_v57 }
  0xe7   :  { %v1503_v1 = vpack.c.bf16 %v236_v62, %v232_v60 }
  0xe8   :  { %1499 = vmatprep.subr.msk.bf16.mxu0 %vm1498_vm3, %v1497_v0 }
  0xe9   :  { %1505 = vmatprep.subr.msk.bf16.mxu1 %vm1498_vm3, %v1503_v1  ;;  %1502 = vmatpush1.bf16.msk.msra.mxu0 %vm1498_vm3, %v1500_v61 }
  0xea   :  { %1508 = vmatpush1.bf16.msk.msra.mxu1 %vm1498_vm3, %v1506_v63 }
  0xec   :  { %1437 = vmatmul.mubr.msk.f32.vlgmr.msra.gmra.mrb[4].mxu0 %vm265_vm4, %v237_v2 }
  0xed   :  { %1443 = vmatmul.mubr.msk.f32.vlgmr.msra.gmra.mrb[4].mxu1 %vm265_vm4, %v237_v2  ;;  %361 = vmatprep.mubr.f32.mxu0 %v1595_v3 }
  0xee   :  { %450 = vmatprep.mubr.f32.mxu1 %v1595_v3 }
  0xf0   :  { %1438 = vmatmul.mubr.msk.f32.gmra.mrb[6].mxu0 %vm265_vm4, %v238_v4 }
  0xf1   :  { %1444 = vmatmul.mubr.msk.f32.gmra.mrb[6].mxu1 %vm265_vm4, %v238_v4  ;;  %367 = vmatprep.mubr.f32.mxu0 %v1595_v3 }
  0xf2   :  { %456 = vmatprep.mubr.f32.mxu1 %v1595_v3 }
  0xf4   :  { %1439 = vmatmul.mubr.msk.f32.gmra.mrb[8].mxu0 %vm265_vm4, %v239_v5 }
  0xf5   :  { %1445 = vmatmul.mubr.msk.f32.gmra.mrb[8].mxu1 %vm265_vm4, %v239_v5  ;;  %373 = vmatprep.mubr.f32.mxu0 %v1595_v3  ;;  %v485_v5 = vld [vmem:[%s1929_s5] sm:$0xff] }
  0xf6   :  { %462 = vmatprep.mubr.f32.mxu1 %v1595_v3 }
  0xf8   :  { %1440 = vmatmul.mubr.msk.f32.gmra.mrb[10].mxu0 %vm265_vm4, %v240_v6 }
  0xf9   :  { %1446 = vmatmul.mubr.msk.f32.gmra.mrb[10].mxu1 %vm265_vm4, %v240_v6  ;;  %603 = vmatprep.mubr.f32.mxu0 %v1595_v3  ;;  %v486_v6 = vld [vmem:[%s1929_s5 + $0x8] sm:$0xff] }
  0xfa   :  { %692 = vmatprep.mubr.f32.mxu1 %v1595_v3 }
 0x1bf   :  { %v357_v8 = vpop.f32.mrb[4].mxu0 }
 0x1c0   :  { %v446_v9 = vpop.f32.mrb[4].mxu1  ;;  %v359_v10 = vpop.f32.mrb[5].mxu0  ;;  %v358_v12 = vadd.f32 %v357_v8, %v248_v7  ;;  %v488_v8 = vld [vmem:[%s1929_s5 + $0x18] sm:$0xf] }
 0x1c1   :  { %v448_v11 = vpop.f32.mrb[5].mxu1  ;;  %v447_v14 = vadd.f32 %v446_v9, %v248_v7  ;;  %v360_v15 = vadd.f32 %v359_v10, %v248_v7 }
 0x1c2   :  { %v449_v17 = vadd.f32 %v448_v11, %v248_v7  ;;  %v469_v24 = vmax.f32 %v358_v12, 0.0  ;;  %v487_v7 = vld [vmem:[%s1929_s5 + $0x10] sm:$0xff]  ;;  %v496_v12 = vpop.permute.xlu0 %495 }
 0x1c3   :  { %v363_v16 = vpop.f32.mrb[6].mxu0  ;;  %v471_v27 = vmax.f32 %v447_v14, 0.0  ;;  %v470_v28 = vmax.f32 %v360_v15, 0.0  ;;  %v501_v15 = vpop.permute.xlu1 %500 }
 0x1c4   :  { %v364_v18 = vadd.f32 %v363_v16, %v253_v13  ;;  %v452_v19 = vpop.f32.mrb[6].mxu1  ;;  %v365_v20 = vpop.f32.mrb[7].mxu0  ;;  %v472_v32 = vmax.f32 %v449_v17, 0.0 }
 0x1c5   :  { %v453_v21 = vadd.f32 %v452_v19, %v253_v13  ;;  %v366_v22 = vadd.f32 %v365_v20, %v253_v13  ;;  %v454_v23 = vpop.f32.mrb[7].mxu1 }
 0x1c6   :  { %v473_v25 = vmax.f32 %v364_v18, 0.0  ;;  %v455_v26 = vadd.f32 %v454_v23, %v253_v13 }
 0x1c7   :  { %v475_v29 = vmax.f32 %v453_v21, 0.0  ;;  %v474_v30 = vmax.f32 %v366_v22, 0.0  ;;  %v369_v31 = vpop.f32.mrb[8].mxu0 }
 0x1c8   :  { %v1511_v33 = vpack.c.bf16 %v473_v25, %v469_v24  ;;  %v476_v34 = vmax.f32 %v455_v26, 0.0  ;;  %v458_v35 = vpop.f32.mrb[8].mxu1  ;;  %v371_v36 = vpop.f32.mrb[9].mxu0  ;;  %v370_v42 = vadd.f32 %v369_v31, %v258_v37 }
 0x1c9   :  { %v1521_v38 = vpack.c.bf16 %v475_v29, %v471_v27  ;;  %v1509_v39 = vpack.c.bf16 %v474_v30, %v470_v28  ;;  %v460_v40 = vpop.f32.mrb[9].mxu1  ;;  %v459_v44 = vadd.f32 %v458_v35, %v258_v37  ;;  %v372_v45 = vadd.f32 %v371_v36, %v258_v37 }
 0x1ca   :  { %v1519_v41 = vpack.c.bf16 %v476_v34, %v472_v32  ;;  %v461_v47 = vadd.f32 %v460_v40, %v258_v37  ;;  %v477_v54 = vmax.f32 %v370_v42, 0.0 }
 0x1cb   :  { %v375_v46 = vpop.f32.mrb[10].mxu0  ;;  %1510 = vmatprep.subr.bf16.mxu0 %v1509_v39  ;;  %v479_v57 = vmax.f32 %v459_v44, 0.0  ;;  %v478_v58 = vmax.f32 %v372_v45, 0.0  ;;  %v506_v39 = vpop.permute.xlu0 %505 }
 0x1cc   :  { %v376_v48 = vadd.f32 %v375_v46, %v263_v43  ;;  %v464_v49 = vpop.f32.mrb[10].mxu1  ;;  %1520 = vmatprep.subr.bf16.mxu1 %v1519_v41  ;;  %v377_v50 = vpop.f32.mrb[11].mxu0  ;;  %1512 = vmatpush1.bf16.msra.mxu0 %v1511_v33  ;;  %v480_v62 = vmax.f32 %v461_v47, 0.0 }
 0x1cd   :  { %v465_v51 = vadd.f32 %v464_v49, %v263_v43  ;;  %v378_v52 = vadd.f32 %v377_v50, %v263_v43  ;;  %v466_v53 = vpop.f32.mrb[11].mxu1  ;;  %1522 = vmatpush1.bf16.msra.mxu1 %v1521_v38  ;;  %v511_v45 = vpop.permute.xlu1 %510 }
 0x1ce   :  { %v481_v55 = vmax.f32 %v376_v48, 0.0  ;;  %v467_v56 = vadd.f32 %v466_v53, %v263_v43 }
 0x1cf   :  { %v483_v59 = vmax.f32 %v465_v51, 0.0  ;;  %v482_v60 = vmax.f32 %v378_v52, 0.0 }
 0x1d0   :  { %v1516_v63 = vpack.c.bf16 %v481_v55, %v477_v54  ;;  %v484_v0 = vmax.f32 %v467_v56, 0.0 }
 0x1d1   :  { %v1526_v1 = vpack.c.bf16 %v483_v59, %v479_v57  ;;  %v1513_v2 = vpack.c.bf16 %v482_v60, %v478_v58 }
 0x1d2   :  { %v1523_v4 = vpack.c.bf16 %v484_v0, %v480_v62 }
 0x1d3   :  { %1515 = vmatprep.subr.msk.bf16.mxu0 %vm1792_vm6, %v1513_v2 }
 0x1d4   :  { %1525 = vmatprep.subr.msk.bf16.mxu1 %vm1792_vm6, %v1523_v4  ;;  %1518 = vmatpush1.bf16.msk.msra.mxu0 %vm1792_vm6, %v1516_v63 }
 0x1d5   :  { %1528 = vmatpush1.bf16.msk.msra.mxu1 %vm1792_vm6, %v1526_v1 }
 0x1d7   :  { %1449 = vmatmul.mubr.msk.f32.vlgmr.msra.gmra.mrb[12].mxu0 %vm513_vm7, %v485_v5 }
 0x1d8   :  { %1455 = vmatmul.mubr.msk.f32.vlgmr.msra.gmra.mrb[12].mxu1 %vm513_vm7, %v485_v5  ;;  %609 = vmatprep.mubr.f32.mxu0 %v1595_v3 }
 0x1d9   :  { %698 = vmatprep.mubr.f32.mxu1 %v1595_v3 }
 0x1db   :  { %1450 = vmatmul.mubr.msk.f32.gmra.mrb[14].mxu0 %vm513_vm7, %v486_v6 }
 0x1dc   :  { %1456 = vmatmul.mubr.msk.f32.gmra.mrb[14].mxu1 %vm513_vm7, %v486_v6  ;;  %615 = vmatprep.mubr.f32.mxu0 %v1595_v3 }
 0x1dd   :  { %704 = vmatprep.mubr.f32.mxu1 %v1595_v3 }
 0x1df   :  { %1451 = vmatmul.mubr.msk.f32.gmra.mrb[16].mxu0 %vm513_vm7, %v487_v7 }
 0x1e0   :  { %1457 = vmatmul.mubr.msk.f32.gmra.mrb[16].mxu1 %vm513_vm7, %v487_v7  ;;  %621 = vmatprep.mubr.f32.mxu0 %v1595_v3  ;;  %v733_v7 = vld [vmem:[%s1930_s7] sm:$0xff] }
 0x1e1   :  { %710 = vmatprep.mubr.f32.mxu1 %v1595_v3 }
 0x1e3   :  { %1452 = vmatmul.mubr.msk.f32.gmra.mrb[18].mxu0 %vm513_vm7, %v488_v8 }
 0x1e4   :  { %1458 = vmatmul.mubr.msk.f32.gmra.mrb[18].mxu1 %vm513_vm7, %v488_v8  ;;  %849 = vmatprep.mubr.f32.mxu0 %v1595_v3  ;;  %v734_v8 = vld [vmem:[%s1930_s7 + $0x8] sm:$0xff] }
 0x1e5   :  { %938 = vmatprep.mubr.f32.mxu1 %v1595_v3 }
 0x2aa   :  { %v605_v9 = vpop.f32.mrb[12].mxu0 }
 0x2ab   :  { %v694_v10 = vpop.f32.mrb[12].mxu1  ;;  %v607_v11 = vpop.f32.mrb[13].mxu0  ;;  %v606_v14 = vadd.f32 %v605_v9, %v496_v12  ;;  %v735_v9 = vld [vmem:[%s1930_s7 + $0x10] sm:$0xff] }
 0x2ac   :  { %v696_v13 = vpop.f32.mrb[13].mxu1  ;;  %v695_v16 = vadd.f32 %v694_v10, %v496_v12  ;;  %v608_v17 = vadd.f32 %v607_v11, %v496_v12  ;;  %v736_v10 = vld [vmem:[%s1930_s7 + $0x18] sm:$0xf] }
 0x2ad   :  { %v697_v19 = vadd.f32 %v696_v13, %v496_v12  ;;  %v717_v26 = vmax.f32 %v606_v14, 0.0  ;;  %v744_v14 = vpop.permute.xlu0 %743 }
 0x2ae   :  { %v611_v18 = vpop.f32.mrb[14].mxu0  ;;  %v719_v29 = vmax.f32 %v695_v16, 0.0  ;;  %v718_v30 = vmax.f32 %v608_v17, 0.0  ;;  %v749_v17 = vpop.permute.xlu1 %748 }
 0x2af   :  { %v612_v20 = vadd.f32 %v611_v18, %v501_v15  ;;  %v700_v21 = vpop.f32.mrb[14].mxu1  ;;  %v613_v22 = vpop.f32.mrb[15].mxu0  ;;  %v720_v34 = vmax.f32 %v697_v19, 0.0 }
 0x2b0   :  { %v701_v23 = vadd.f32 %v700_v21, %v501_v15  ;;  %v614_v24 = vadd.f32 %v613_v22, %v501_v15  ;;  %v702_v25 = vpop.f32.mrb[15].mxu1 }
 0x2b1   :  { %v721_v27 = vmax.f32 %v612_v20, 0.0  ;;  %v703_v28 = vadd.f32 %v702_v25, %v501_v15 }
 0x2b2   :  { %v723_v31 = vmax.f32 %v701_v23, 0.0  ;;  %v722_v32 = vmax.f32 %v614_v24, 0.0  ;;  %v617_v33 = vpop.f32.mrb[16].mxu0 }
 0x2b3   :  { %v1531_v35 = vpack.c.bf16 %v721_v27, %v717_v26  ;;  %v724_v36 = vmax.f32 %v703_v28, 0.0  ;;  %v706_v37 = vpop.f32.mrb[16].mxu1  ;;  %v619_v38 = vpop.f32.mrb[17].mxu0  ;;  %v618_v44 = vadd.f32 %v617_v33, %v506_v39 }
 0x2b4   :  { %v1541_v40 = vpack.c.bf16 %v723_v31, %v719_v29  ;;  %v1529_v41 = vpack.c.bf16 %v722_v32, %v718_v30  ;;  %v708_v42 = vpop.f32.mrb[17].mxu1  ;;  %v707_v46 = vadd.f32 %v706_v37, %v506_v39  ;;  %v620_v47 = vadd.f32 %v619_v38, %v506_v39 }
 0x2b5   :  { %v1539_v43 = vpack.c.bf16 %v724_v36, %v720_v34  ;;  %v709_v49 = vadd.f32 %v708_v42, %v506_v39  ;;  %v725_v56 = vmax.f32 %v618_v44, 0.0 }
 0x2b6   :  { %v623_v48 = vpop.f32.mrb[18].mxu0  ;;  %1530 = vmatprep.subr.bf16.mxu0 %v1529_v41  ;;  %v727_v59 = vmax.f32 %v707_v46, 0.0  ;;  %v726_v60 = vmax.f32 %v620_v47, 0.0  ;;  %v754_v41 = vpop.permute.xlu0 %753 }
 0x2b7   :  { %v624_v50 = vadd.f32 %v623_v48, %v511_v45  ;;  %v712_v51 = vpop.f32.mrb[18].mxu1  ;;  %1540 = vmatprep.subr.bf16.mxu1 %v1539_v43  ;;  %v625_v52 = vpop.f32.mrb[19].mxu0  ;;  %1532 = vmatpush1.bf16.msra.mxu0 %v1531_v35  ;;  %v728_v0 = vmax.f32 %v709_v49, 0.0 }
 0x2b8   :  { %v713_v53 = vadd.f32 %v712_v51, %v511_v45  ;;  %v626_v54 = vadd.f32 %v625_v52, %v511_v45  ;;  %v714_v55 = vpop.f32.mrb[19].mxu1  ;;  %1542 = vmatpush1.bf16.msra.mxu1 %v1541_v40  ;;  %v759_v47 = vpop.permute.xlu1 %758 }
 0x2b9   :  { %v729_v57 = vmax.f32 %v624_v50, 0.0  ;;  %v715_v58 = vadd.f32 %v714_v55, %v511_v45 }
 0x2ba   :  { %v731_v62 = vmax.f32 %v713_v53, 0.0  ;;  %v730_v63 = vmax.f32 %v626_v54, 0.0 }
 0x2bb   :  { %v1536_v1 = vpack.c.bf16 %v729_v57, %v725_v56  ;;  %v732_v2 = vmax.f32 %v715_v58, 0.0 }
 0x2bc   :  { %v1546_v4 = vpack.c.bf16 %v731_v62, %v727_v59  ;;  %v1533_v5 = vpack.c.bf16 %v730_v63, %v726_v60 }
 0x2bd   :  { %v1543_v6 = vpack.c.bf16 %v732_v2, %v728_v0 }
 0x2be   :  { %1535 = vmatprep.subr.msk.bf16.mxu0 %vm1792_vm6, %v1533_v5 }
 0x2bf   :  { %1545 = vmatprep.subr.msk.bf16.mxu1 %vm1792_vm6, %v1543_v6  ;;  %1538 = vmatpush1.bf16.msk.msra.mxu0 %vm1792_vm6, %v1536_v1 }
 0x2c0   :  { %1548 = vmatpush1.bf16.msk.msra.mxu1 %vm1792_vm6, %v1546_v4 }
 0x2c2   :  { %1461 = vmatmul.mubr.msk.f32.vlgmr.msra.gmra.mrb[20].mxu0 %vm513_vm7, %v733_v7 }
 0x2c3   :  { %1467 = vmatmul.mubr.msk.f32.vlgmr.msra.gmra.mrb[20].mxu1 %vm513_vm7, %v733_v7  ;;  %855 = vmatprep.mubr.f32.mxu0 %v1595_v3 }
 0x2c4   :  { %944 = vmatprep.mubr.f32.mxu1 %v1595_v3 }
 0x2c6   :  { %1462 = vmatmul.mubr.msk.f32.gmra.mrb[22].mxu0 %vm513_vm7, %v734_v8 }
 0x2c7   :  { %1468 = vmatmul.mubr.msk.f32.gmra.mrb[22].mxu1 %vm513_vm7, %v734_v8  ;;  %861 = vmatprep.mubr.f32.mxu0 %v1595_v3 }
 0x2c8   :  { %950 = vmatprep.mubr.f32.mxu1 %v1595_v3 }
 0x2ca   :  { %1463 = vmatmul.mubr.msk.f32.gmra.mrb[24].mxu0 %vm513_vm7, %v735_v9 }
 0x2cb   :  { %1469 = vmatmul.mubr.msk.f32.gmra.mrb[24].mxu1 %vm513_vm7, %v735_v9  ;;  %867 = vmatprep.mubr.f32.mxu0 %v1595_v3  ;;  %v979_v9 = vld [vmem:[%s1931_s9] sm:$0xff] }
 0x2cc   :  { %956 = vmatprep.mubr.f32.mxu1 %v1595_v3 }
 0x2ce   :  { %1464 = vmatmul.mubr.msk.f32.gmra.mrb[26].mxu0 %vm513_vm7, %v736_v10 }
 0x2cf   :  { %1470 = vmatmul.mubr.msk.f32.gmra.mrb[26].mxu1 %vm513_vm7, %v736_v10  ;;  %1095 = vmatprep.mubr.f32.mxu0 %v1595_v3  ;;  %v980_v10 = vld [vmem:[%s1931_s9 + $0x8] sm:$0xff] }
 0x2d0   :  { %1184 = vmatprep.mubr.f32.mxu1 %v1595_v3 }
 0x395   :  { %v851_v11 = vpop.f32.mrb[20].mxu0 }
 0x396   :  { %v940_v12 = vpop.f32.mrb[20].mxu1  ;;  %v853_v13 = vpop.f32.mrb[21].mxu0  ;;  %v852_v16 = vadd.f32 %v851_v11, %v744_v14  ;;  %v981_v11 = vld [vmem:[%s1931_s9 + $0x10] sm:$0xff] }
 0x397   :  { %v942_v15 = vpop.f32.mrb[21].mxu1  ;;  %v941_v18 = vadd.f32 %v940_v12, %v744_v14  ;;  %v854_v19 = vadd.f32 %v853_v13, %v744_v14  ;;  %v982_v12 = vld [vmem:[%s1931_s9 + $0x18] sm:$0xf] }
 0x398   :  { %v943_v21 = vadd.f32 %v942_v15, %v744_v14  ;;  %v963_v28 = vmax.f32 %v852_v16, 0.0  ;;  %v990_v16 = vpop.permute.xlu0 %989 }
 0x399   :  { %v857_v20 = vpop.f32.mrb[22].mxu0  ;;  %v965_v31 = vmax.f32 %v941_v18, 0.0  ;;  %v964_v32 = vmax.f32 %v854_v19, 0.0  ;;  %v995_v19 = vpop.permute.xlu1 %994 }
 0x39a   :  { %v858_v22 = vadd.f32 %v857_v20, %v749_v17  ;;  %v946_v23 = vpop.f32.mrb[22].mxu1  ;;  %v859_v24 = vpop.f32.mrb[23].mxu0  ;;  %v966_v36 = vmax.f32 %v943_v21, 0.0 }
 0x39b   :  { %v947_v25 = vadd.f32 %v946_v23, %v749_v17  ;;  %v860_v26 = vadd.f32 %v859_v24, %v749_v17  ;;  %v948_v27 = vpop.f32.mrb[23].mxu1 }
 0x39c   :  { %v967_v29 = vmax.f32 %v858_v22, 0.0  ;;  %v949_v30 = vadd.f32 %v948_v27, %v749_v17 }
 0x39d   :  { %v969_v33 = vmax.f32 %v947_v25, 0.0  ;;  %v968_v34 = vmax.f32 %v860_v26, 0.0  ;;  %v863_v35 = vpop.f32.mrb[24].mxu0 }
 0x39e   :  { %v1551_v37 = vpack.c.bf16 %v967_v29, %v963_v28  ;;  %v970_v38 = vmax.f32 %v949_v30, 0.0  ;;  %v952_v39 = vpop.f32.mrb[24].mxu1  ;;  %v865_v40 = vpop.f32.mrb[25].mxu0  ;;  %v864_v46 = vadd.f32 %v863_v35, %v754_v41 }
 0x39f   :  { %v1561_v42 = vpack.c.bf16 %v969_v33, %v965_v31  ;;  %v1549_v43 = vpack.c.bf16 %v968_v34, %v964_v32  ;;  %v954_v44 = vpop.f32.mrb[25].mxu1  ;;  %v953_v48 = vadd.f32 %v952_v39, %v754_v41  ;;  %v866_v49 = vadd.f32 %v865_v40, %v754_v41 }
 0x3a0   :  { %v1559_v45 = vpack.c.bf16 %v970_v38, %v966_v36  ;;  %v955_v51 = vadd.f32 %v954_v44, %v754_v41  ;;  %v971_v58 = vmax.f32 %v864_v46, 0.0 }
 0x3a1   :  { %v869_v50 = vpop.f32.mrb[26].mxu0  ;;  %1550 = vmatprep.subr.bf16.mxu0 %v1549_v43  ;;  %v973_v62 = vmax.f32 %v953_v48, 0.0  ;;  %v972_v63 = vmax.f32 %v866_v49, 0.0  ;;  %v1005_v48 = vpop.permute.xlu1 %1004 }
 0x3a2   :  { %v870_v52 = vadd.f32 %v869_v50, %v759_v47  ;;  %v958_v53 = vpop.f32.mrb[26].mxu1  ;;  %1560 = vmatprep.subr.bf16.mxu1 %v1559_v45  ;;  %v871_v54 = vpop.f32.mrb[27].mxu0  ;;  %1552 = vmatpush1.bf16.msra.mxu0 %v1551_v37  ;;  %v974_v2 = vmax.f32 %v955_v51, 0.0 }
 0x3a3   :  { %v959_v55 = vadd.f32 %v958_v53, %v759_v47  ;;  %v872_v56 = vadd.f32 %v871_v54, %v759_v47  ;;  %v960_v57 = vpop.f32.mrb[27].mxu1  ;;  %1562 = vmatpush1.bf16.msra.mxu1 %v1561_v42  ;;  %v1000_v42 = vpop.permute.xlu0 %999 }
 0x3a4   :  { %v975_v59 = vmax.f32 %v870_v52, 0.0  ;;  %v961_v60 = vadd.f32 %v960_v57, %v759_v47 }
 0x3a5   :  { %v977_v0 = vmax.f32 %v959_v55, 0.0  ;;  %v976_v1 = vmax.f32 %v872_v56, 0.0 }
 0x3a6   :  { %v1556_v4 = vpack.c.bf16 %v975_v59, %v971_v58  ;;  %v978_v5 = vmax.f32 %v961_v60, 0.0 }
 0x3a7   :  { %v1566_v6 = vpack.c.bf16 %v977_v0, %v973_v62  ;;  %v1553_v7 = vpack.c.bf16 %v976_v1, %v972_v63 }
 0x3a8   :  { %v1563_v8 = vpack.c.bf16 %v978_v5, %v974_v2 }
 0x3a9   :  { %1555 = vmatprep.subr.msk.bf16.mxu0 %vm1792_vm6, %v1553_v7 }
 0x3aa   :  { %1565 = vmatprep.subr.msk.bf16.mxu1 %vm1792_vm6, %v1563_v8  ;;  %1558 = vmatpush1.bf16.msk.msra.mxu0 %vm1792_vm6, %v1556_v4 }
 0x3ab   :  { %1568 = vmatpush1.bf16.msk.msra.mxu1 %vm1792_vm6, %v1566_v6 }
 0x3ad   :  { %1473 = vmatmul.mubr.msk.f32.vlgmr.msra.gmra.mrb[28].mxu0 %vm513_vm7, %v979_v9 }
 0x3ae   :  { %1479 = vmatmul.mubr.msk.f32.vlgmr.msra.gmra.mrb[28].mxu1 %vm513_vm7, %v979_v9  ;;  %1101 = vmatprep.mubr.f32.mxu0 %v1595_v3 }
 0x3af   :  { %1190 = vmatprep.mubr.f32.mxu1 %v1595_v3 }
 0x3b1   :  { %1474 = vmatmul.mubr.msk.f32.gmra.mrb[30].mxu0 %vm513_vm7, %v980_v10 }
 0x3b2   :  { %1480 = vmatmul.mubr.msk.f32.gmra.mrb[30].mxu1 %vm513_vm7, %v980_v10  ;;  %1107 = vmatprep.mubr.f32.mxu0 %v1595_v3  ;;  %v1225_v10 = vld [vmem:[%s1932_s11] sm:$0x1] }
 0x3b3   :  { %1196 = vmatprep.mubr.f32.mxu1 %v1595_v3 }
 0x3b5   :  { %1475 = vmatmul.mubr.msk.f32.gmra.mrb[32].mxu0 %vm513_vm7, %v981_v11 }
 0x3b6   :  { %1481 = vmatmul.mubr.msk.f32.gmra.mrb[32].mxu1 %vm513_vm7, %v981_v11  ;;  %1113 = vmatprep.mubr.f32.mxu0 %v1595_v3  ;;  %v1232_v11 = vlaneseq }
 0x3b7   :  { %1202 = vmatprep.mubr.f32.mxu1 %v1595_v3 }
 0x3b8   :  { %vm1424_vm8 = vcmp.lt.s32.totalorder %v1232_v11, 512 }
 0x3b9   :  { %1476 = vmatmul.mubr.msk.f32.gmra.mrb[34].mxu0 %vm513_vm7, %v982_v12 }
 0x3ba   :  { %1482 = vmatmul.mubr.msk.f32.gmra.mrb[34].mxu1 %vm513_vm7, %v982_v12  ;;  %1315 = vmatprep.mubr.f32.mxu0 %v1595_v3  ;;  %v1233_v12 = vshrl.u32 %v1232_v11, 7 }
 0x3bb   :  { %1386 = vmatprep.mubr.f32.mxu1 %v1595_v3 }
 0x480   :  { %v1097_v13 = vpop.f32.mrb[28].mxu0 }
 0x481   :  { %v1186_v14 = vpop.f32.mrb[28].mxu1  ;;  %v1099_v15 = vpop.f32.mrb[29].mxu0  ;;  %v1098_v18 = vadd.f32 %v1097_v13, %v990_v16  ;;  %v1598_v13 = vmov 1966171168  }
 0x482   :  { %v1188_v17 = vpop.f32.mrb[29].mxu1  ;;  %v1187_v20 = vadd.f32 %v1186_v14, %v990_v16  ;;  %v1100_v21 = vadd.f32 %v1099_v15, %v990_v16  ;;  %v1400_v14 = vunpack.c.l.s4 %v1598_v13  ;;  %v1234_v15 = vsub.s32 0, %v1233_v12 }
 0x483   :  { %v1189_v23 = vadd.f32 %v1188_v17, %v990_v16  ;;  %v1209_v30 = vmax.f32 %v1098_v18, 0.0  ;;  %v1230_v16 = vpop.permute.xlu0 %1229 }
 0x484   :  { %v1103_v22 = vpop.f32.mrb[30].mxu0  ;;  %v1211_v32 = vmax.f32 %v1187_v20, 0.0  ;;  %v1210_v33 = vmax.f32 %v1100_v21, 0.0  ;;  %v1401_v17 = vunpack.c.0.s8 %v1400_v14  ;;  %v1235_v18 = vrot.slane %v1230_v16, %v1234_v15 }
 0x485   :  { %v1104_v24 = vadd.f32 %v1103_v22, %v995_v19  ;;  %v1192_v25 = vpop.f32.mrb[30].mxu1  ;;  %v1105_v26 = vpop.f32.mrb[31].mxu0  ;;  %v1212_v37 = vmax.f32 %v1189_v23, 0.0 }
 0x486   :  { %v1193_v27 = vadd.f32 %v1192_v25, %v995_v19  ;;  %v1106_v28 = vadd.f32 %v1105_v26, %v995_v19  ;;  %v1194_v29 = vpop.f32.mrb[31].mxu1  ;;  %v1404_v23 = vsub.s32 %v1401_v17, %v1233_v12 }
 0x487   :  { %v1213_v31 = vmax.f32 %v1104_v24, 0.0  ;;  %v1195_v3 = vadd.f32 %v1194_v29, %v995_v19 }
 0x488   :  { %v1215_v34 = vmax.f32 %v1193_v27, 0.0  ;;  %v1214_v35 = vmax.f32 %v1106_v28, 0.0  ;;  %v1109_v36 = vpop.f32.mrb[32].mxu0 }
 0x489   :  { %v1571_v38 = vpack.c.bf16 %v1213_v31, %v1209_v30  ;;  %v1216_v39 = vmax.f32 %v1195_v3, 0.0  ;;  %v1198_v40 = vpop.f32.mrb[32].mxu1  ;;  %v1111_v41 = vpop.f32.mrb[33].mxu0  ;;  %v1110_v47 = vadd.f32 %v1109_v36, %v1000_v42 }
 0x48a   :  { %v1581_v43 = vpack.c.bf16 %v1215_v34, %v1211_v32  ;;  %v1569_v44 = vpack.c.bf16 %v1214_v35, %v1210_v33  ;;  %v1200_v45 = vpop.f32.mrb[33].mxu1  ;;  %v1199_v49 = vadd.f32 %v1198_v40, %v1000_v42  ;;  %v1112_v50 = vadd.f32 %v1111_v41, %v1000_v42 }
 0x48b   :  { %v1579_v46 = vpack.c.bf16 %v1216_v39, %v1212_v37  ;;  %v1201_v52 = vadd.f32 %v1200_v45, %v1000_v42  ;;  %v1217_v59 = vmax.f32 %v1110_v47, 0.0 }
 0x48c   :  { %v1115_v51 = vpop.f32.mrb[34].mxu0  ;;  %1570 = vmatprep.subr.bf16.mxu0 %v1569_v44  ;;  %v1219_v63 = vmax.f32 %v1199_v49, 0.0  ;;  %v1218_v0 = vmax.f32 %v1112_v50, 0.0 }
 0x48d   :  { %v1116_v53 = vadd.f32 %v1115_v51, %v1005_v48  ;;  %v1204_v54 = vpop.f32.mrb[34].mxu1  ;;  %1580 = vmatprep.subr.bf16.mxu1 %v1579_v46  ;;  %v1117_v55 = vpop.f32.mrb[35].mxu0  ;;  %1572 = vmatpush1.bf16.msra.mxu0 %v1571_v38  ;;  %v1220_v4 = vmax.f32 %v1201_v52, 0.0 }
 0x48e   :  { %v1205_v56 = vadd.f32 %v1204_v54, %v1005_v48  ;;  %v1118_v57 = vadd.f32 %v1117_v55, %v1005_v48  ;;  %v1206_v58 = vpop.f32.mrb[35].mxu1  ;;  %1582 = vmatpush1.bf16.msra.mxu1 %v1581_v43 }
 0x48f   :  { %v1221_v60 = vmax.f32 %v1116_v53, 0.0  ;;  %v1207_v62 = vadd.f32 %v1206_v58, %v1005_v48 }
 0x490   :  { %v1223_v1 = vmax.f32 %v1205_v56, 0.0  ;;  %v1222_v2 = vmax.f32 %v1118_v57, 0.0 }
 0x491   :  { %v1576_v5 = vpack.c.bf16 %v1221_v60, %v1217_v59  ;;  %v1224_v6 = vmax.f32 %v1207_v62, 0.0 }
 0x492   :  { %v1586_v7 = vpack.c.bf16 %v1223_v1, %v1219_v63  ;;  %v1573_v8 = vpack.c.bf16 %v1222_v2, %v1218_v0 }
 0x493   :  { %v1583_v9 = vpack.c.bf16 %v1224_v6, %v1220_v4 }
 0x494   :  { %1575 = vmatprep.subr.msk.bf16.mxu0 %vm1792_vm6, %v1573_v8 }
 0x495   :  { %1585 = vmatprep.subr.msk.bf16.mxu1 %vm1792_vm6, %v1583_v9  ;;  %1578 = vmatpush1.bf16.msk.msra.mxu0 %vm1792_vm6, %v1576_v5 }
 0x496   :  { %1588 = vmatpush1.bf16.msk.msra.mxu1 %vm1792_vm6, %v1586_v7 }
 0x498   :  { %1485 = vmatmul.mubr.msk.f32.vlgmr.msra.gmra.mrb[36].mxu0 %vm513_vm7, %v1225_v10 }
 0x499   :  { %1488 = vmatmul.mubr.msk.f32.vlgmr.msra.gmra.mrb[36].mxu1 %vm513_vm7, %v1225_v10 }
 0x56b   :  { %v1317_v19 = vpop.f32.mrb[36].mxu0 }
 0x56c   :  { %v1318_v20 = vadd.f32 %v1317_v19, %v1235_v18  ;;  %v1388_v21 = vpop.f32.mrb[36].mxu1  ;;  %v1319_v22 = vpop.f32.mrb[37].mxu0 }
 0x56d   :  { %v1389_v24 = vadd.f32 %v1388_v21, %v1235_v18  ;;  %v1320_v61 = vadd.f32 %v1319_v22, %v1235_v18  ;;  %v1390_v25 = vpop.f32.mrb[37].mxu1 }
 0x56e   :  { %v1391_v26 = vadd.f32 %v1390_v25, %v1235_v18 }
 0x56f   :  { %v1397_v27 = vcombine.low %v1318_v20, %v1320_v61 }
 0x570   :  { %v1398_v28 = vcombine.low %v1389_v24, %v1391_v26 }
 0x571   :  { %v1405_v29 = vrot.slane %v1397_v27, %v1404_v23 }
 0x572   :  { %v1412_v30 = vrot.slane %v1398_v28, %v1404_v23 }
 0x574   :  { %v1413_v31 = vcombine.low %v1405_v29, %v1412_v30 }
 0x576   :  { %v1420_v3 = vrot.slane %v1413_v31, %v1404_v23 }
 0x578   :  { %1426 = vst.msk [vmem:[%s1933_s13] sm:$0xf] %vm1424_vm8, %v1420_v3 }

</bundles_post_ra>
